<compile_context>
chip_gen: v7x
topology: tpu7x:2x2x1
jax: 0.10.0
libtpu: 0.0.40
codegen_flags: <defaults>
</compile_context>

<pallas_src>
import jax
import jax.numpy as jnp
from jax.experimental import pallas as pl
from jax.experimental.pallas import tpu as pltpu

# Module-level constants from the PyTorch spec.
MIN_VALUE = 1.0
MAX_VALUE = 1.0

LANES = 128
SUBLANES = 8


def _make_linear_clamp_kernel(min_value, max_value, apply_relu):
    """y = clamp(maybe_relu(x @ W + b), min, max) on one (TB, lanes) tile."""
    def kernel(x_ref, w_ref, b_ref, o_ref):
        y = jnp.dot(x_ref[...], w_ref[...], preferred_element_type=jnp.float32)
        y = y + b_ref[...]                 # bias broadcast over rows
        if apply_relu:                     # only when min_value < 0
            y = jnp.maximum(y, 0.0)
        y = jnp.maximum(y, min_value)      # clamp_min
        y = jnp.minimum(y, max_value)      # clamp_max
        o_ref[...] = y.astype(o_ref.dtype)
    return kernel


def _pick_tile(rows):
    """Rows per grid step: large tiles for HBM roofline, but >= 2 grid steps
    when possible (v7x has 2 TCs sharing 'parallel' axes) and a sublane
    multiple.  2048 x 128 x 4B = 1 MiB per x/out block."""
    if rows <= SUBLANES:
        return rows                               # full-extent block (legal)
    half = (rows // 2) // SUBLANES * SUBLANES
    return min(2048, max(SUBLANES, half))


def linear_relu_clamp(x, weight, bias,
                      min_value=MIN_VALUE, max_value=MAX_VALUE):
    """x: (B, In) f32; weight: (Out, In) (PyTorch layout); bias: (Out,)."""
    B, In = x.shape
    Out = weight.shape[0]
    dtype = x.dtype

    # ---- Degenerate constants (the module's min == max == 1) -------------
    # clamp_min pushes everything to >= min >= max, clamp_max pins it to max,
    # so every output element is max_value.  Plain broadcast, no kernel.
    # TODO(synk): PyTorch would propagate NaN inputs; this fold returns max_value.
    if min_value >= max_value:
        return jnp.full((B, Out), max_value, dtype=dtype)

    apply_relu = bool(min_value < 0.0)     # relu subsumed by clamp_min if min >= 0
    kernel = _make_linear_clamp_kernel(float(min_value), float(max_value),
                                       apply_relu)
    w_t = weight.T.astype(dtype)           # (In, Out): hot loop is x @ W^T

    # ---- Lane-dense packed path (In, Out divide 128) ----------------------
    if LANES % In == 0 and LANES % Out == 0:
        pack = LANES // max(In, Out)        # 16 for Linear(8, 8)
        in_l, out_l = pack * In, pack * Out

        # Pad batch so the packed row count is a sublane multiple (zero pad
        # rows are computed and sliced off; negligible).
        bp = -(-B // (pack * SUBLANES)) * (pack * SUBLANES)
        xp = jnp.pad(x, ((0, bp - B), (0, 0))) if bp != B else x
        rows = bp // pack
        xr = xp.reshape(rows, in_l)         # contiguous view, no transpose

        # Block-diagonal weight + tiled bias: fetched once (constant index
        # maps), resident across all grid steps (~64 KiB).
        w_bd = jnp.kron(jnp.eye(pack, dtype=dtype), w_t)          # (in_l, out_l)
        b_t = jnp.tile(bias.astype(dtype), pack).reshape(1, out_l)

        tb = _pick_tile(rows)
        grid = (pl.cdiv(rows, tb),)

        # Explicit VMEM budget: double-buffered x + out blocks, resident W/b.
        vmem_bytes = (2 * 2 * tb * max(in_l, out_l) * 4
                      + in_l * out_l * 4 + out_l * 4)
        vmem_limit = int(min(max(2 * vmem_bytes, 16 << 20), 32 << 20))

        out_r = pl.pallas_call(
            kernel,
            out_shape=jax.ShapeDtypeStruct((rows, out_l), dtype),
            grid=grid,
            in_specs=[
                pl.BlockSpec((tb, in_l), lambda i: (i, 0)),
                pl.BlockSpec((in_l, out_l), lambda i: (0, 0)),
                pl.BlockSpec((1, out_l), lambda i: (0, 0)),
            ],
            out_specs=pl.BlockSpec((tb, out_l), lambda i: (i, 0)),
            compiler_params=pltpu.CompilerParams(
                dimension_semantics=("parallel",),
                vmem_limit_bytes=vmem_limit,
            ),
        )(xr, w_bd, b_t)
        return out_r.reshape(bp, Out)[:B]

    # ---- Fallback for shapes that don't pack into 128 lanes ---------------
    b2d = bias.astype(dtype).reshape(1, Out)
    tb = _pick_tile(B)
    grid = (pl.cdiv(B, tb),)
    return pl.pallas_call(
        kernel,
        out_shape=jax.ShapeDtypeStruct((B, Out), dtype),
        grid=grid,
        in_specs=[
            pl.BlockSpec((tb, In), lambda i: (i, 0)),
            pl.BlockSpec((In, Out), lambda i: (0, 0)),
            pl.BlockSpec((1, Out), lambda i: (0, 0)),
        ],
        out_specs=pl.BlockSpec((tb, Out), lambda i: (i, 0)),
        compiler_params=pltpu.CompilerParams(
            dimension_semantics=("parallel",)),
    )(x, w_t, b2d)


def _reference(x, weight, bias, min_value, max_value):
    y = x @ weight.T + bias
    y = jnp.maximum(y, 0.0)
    y = jnp.maximum(y, min_value)
    y = jnp.minimum(y, max_value)
    return y


if __name__ == "__main__":
    key = jax.random.PRNGKey(0)
    kx, kw, kb, kx2, kx3 = jax.random.split(key, 5)

    # Module input: x ~ randn(1, 8)
    x = jax.random.normal(kx, (1, 8), dtype=jnp.float32)

    # Deterministic Linear(8, 8) params (PyTorch-style uniform init range).
    bound = 1.0 / jnp.sqrt(8.0)
    weight = jax.random.uniform(kw, (8, 8), dtype=jnp.float32,
                                minval=-bound, maxval=bound)
    bias = jax.random.uniform(kb, (8,), dtype=jnp.float32,
                              minval=-bound, maxval=bound)

    # --- Module-faithful forward (min == max == 1 -> constant fold) --------
    out = linear_relu_clamp(x, weight, bias)
    jax.block_until_ready(out)
    ref = _reference(x, weight, bias, MIN_VALUE, MAX_VALUE)
    assert out.shape == (1, 8)
    assert jnp.allclose(out, ref, atol=1e-5), (out, ref)

    # --- Lane-dense general kernel path (non-degenerate clamps), aligned B --
    xb = jax.random.normal(kx2, (512, 8), dtype=jnp.float32)
    out2 = linear_relu_clamp(xb, weight, bias, min_value=0.0, max_value=6.0)
    jax.block_until_ready(out2)
    ref2 = _reference(xb, weight, bias, 0.0, 6.0)
    assert out2.shape == (512, 8)
    assert jnp.allclose(out2, ref2, atol=1e-4, rtol=1e-4), "general path mismatch"

    # --- Unaligned batch (exercises padding/slice) + relu-active clamps -----
    xc = jax.random.normal(kx3, (300, 8), dtype=jnp.float32)
    out3 = linear_relu_clamp(xc, weight, bias, min_value=-2.0, max_value=0.5)
    jax.block_until_ready(out3)
    ref3 = _reference(xc, weight, bias, -2.0, 0.5)
    assert out3.shape == (300, 8)
    assert jnp.allclose(out3, ref3, atol=1e-4, rtol=1e-4), "padded path mismatch"

    print("KERNEL_OK")
</pallas_src>

<mosaic_0001>
module attributes {stable_mosaic.version = 11 : i64} {
  func.func @kernel(%arg0: i32, %arg1: memref<16x128xf32, #tpu.memory_space<vmem>>, %arg2: memref<128x128xf32, #tpu.memory_space<vmem>>, %arg3: memref<1x128xf32, #tpu.memory_space<vmem>>, %arg4: memref<16x128xf32, #tpu.memory_space<vmem>>) attributes {dimension_semantics = [#tpu.dimension_semantics<parallel>], iteration_bounds = array<i64: 2>, scalar_prefetch = 0 : i64, scratch_operands = 0 : i64, tpu.core_type = #tpu.core_type<tc>, window_params = [{transform_indices = @transform_0, window_bounds = array<i64: 16, 128>}, {pipeline_mode = #tpu.pipeline_mode<synchronous>, transform_indices = @transform_1, window_bounds = array<i64: 128, 128>}, {pipeline_mode = #tpu.pipeline_mode<synchronous>, transform_indices = @transform_2, window_bounds = array<i64: 1, 128>}, {transform_indices = @transform_3, window_bounds = array<i64: 16, 128>}]} {
    %c0 = arith.constant 0 : index
    %c0_0 = arith.constant 0 : index
    %0 = vector.load %arg1[%c0, %c0_0] : memref<16x128xf32, #tpu.memory_space<vmem>>, vector<16x128xf32>
    %c0_1 = arith.constant 0 : index
    %c0_2 = arith.constant 0 : index
    %1 = vector.load %arg2[%c0_1, %c0_2] : memref<128x128xf32, #tpu.memory_space<vmem>>, vector<128x128xf32>
    %cst = arith.constant dense<0.000000e+00> : vector<16x128xf32>
    %2 = tpu.matmul %0, %1, %cst {dimension_numbers = #tpu.dot_dimension_numbers<[1], [0], [0], [1], [0, 0, 1, 1], [], []>} : vector<16x128xf32>, vector<128x128xf32>, vector<16x128xf32> -> vector<16x128xf32>
    %c0_3 = arith.constant 0 : index
    %c0_4 = arith.constant 0 : index
    %3 = vector.load %arg3[%c0_3, %c0_4] : memref<1x128xf32, #tpu.memory_space<vmem>>, vector<1x128xf32>
    %4 = vector.broadcast %3 : vector<1x128xf32> to vector<16x128xf32>
    %5 = arith.addf %2, %4 : vector<16x128xf32>
    %cst_5 = arith.constant 0.000000e+00 : f32
    %6 = vector.broadcast %cst_5 : f32 to vector<16x128xf32>
    %7 = arith.maximumf %5, %6 : vector<16x128xf32>
    %cst_6 = arith.constant 6.000000e+00 : f32
    %8 = vector.broadcast %cst_6 : f32 to vector<16x128xf32>
    %9 = arith.minimumf %7, %8 : vector<16x128xf32>
    %c0_7 = arith.constant 0 : index
    %c0_8 = arith.constant 0 : index
    %10 = vector.load %arg4[%c0_7, %c0_8] : memref<16x128xf32, #tpu.memory_space<vmem>>, vector<16x128xf32>
    tpu.vector_store %arg4[%c0_7, %c0_8], %9 {strides = array<i32>} : memref<16x128xf32, #tpu.memory_space<vmem>>, vector<16x128xf32>,
    return
  }
  func.func @transform_0(%arg0: i32) -> (i32, i32) {
    %c0_i32 = arith.constant 0 : i32
    %c0_i32_0 = arith.constant 0 : i32
    return %arg0, %c0_i32 : i32, i32
  }
  func.func @transform_1(%arg0: i32) -> (i32, i32) {
    %c0_i32 = arith.constant 0 : i32
    %c0_i32_0 = arith.constant 0 : i32
    %c0_i32_1 = arith.constant 0 : i32
    return %c0_i32, %c0_i32_0 : i32, i32
  }
  func.func @transform_2(%arg0: i32) -> (i32, i32) {
    %c0_i32 = arith.constant 0 : i32
    %c0_i32_0 = arith.constant 0 : i32
    %c0_i32_1 = arith.constant 0 : i32
    return %c0_i32, %c0_i32_0 : i32, i32
  }
  func.func @transform_3(%arg0: i32) -> (i32, i32) {
    %c0_i32 = arith.constant 0 : i32
    %c0_i32_0 = arith.constant 0 : i32
    return %arg0, %c0_i32 : i32, i32
  }
}

</mosaic_0001>

<bundles_post_ra>
// kernel: tpu_custom_call.1
= control target key start
LH: loop header
LB: loop body
LE: loop exit
PB: predicated region body
PF: predicated region fallthrough
CT: control target
= control target key end

     0   :  { %8 = vsyncpa [#allocation3], 0  ;;  %s949_s0 = inlined_call_operand.hbm [shape: f32[32,128], index: 0, kind: input, shape index: {}]   ;;  %s950_s1 = inlined_call_operand.hbm [shape: f32[128,128], index: 1, kind: input, shape index: {}]   ;;  %s951_s2 = inlined_call_operand.vmem [shape: f32[1,128], index: 2, kind: input, shape index: {}]   ;;  %s952_s3 = inlined_call_operand.hbm [shape: f32[32,128], index: 3, kind: output, shape index: {}]  }
   0x1   :  { %10 = vsyncpa [#allocation3 + $0x1], 0 }
   0x2   :  { %11 = vsyncpa [#allocation6], 0 }
   0x3   :  { %12 = vsyncpa [#allocation4], 0 }
   0x4   :  { %14 = vsyncpa [#allocation4 + $0x1], 0  ;;  %s731_s12 = smov 0   ;;  %s733_s13 = smov 0  }
   0x5   :  { %s735_s14 = smov 0   ;;  %s737_s15 = smov 0  }
   0x6 LB: > { %s752_s16 = sadd.s32 4294967295, %s702_s15   ;;  %s409_s17 = sadd.s32 4294967294, %s702_s15   ;;  %s702_s15 = sphi %s737_s15, %s972_s15   ;;  %s698_s14 = sphi %s735_s14, %s971_s14   ;;  %s694_s13 = sphi %s733_s13, %s970_s13   ;;  %s690_s12 = sphi %s731_s12, %s969_s12  }
   0x7   : > { %p40_p0 = scmp.ne.s32.totalorder %s694_s13, %s690_s12  ;;  %p953_p1 = scmp.eq.s32.totalorder %s752_s16, 0 }
   0x8   : > { %p112_p3 = scmp.eq.s32.totalorder %s409_s17, 1  ;;  %p410_p5 = scmp.ge.s32.totalorder %s702_s15, 1 }
   0x9   : > { %p761_p4 = por %p953_p1, %p40_p0  ;;  %p119_p7 = scmp.lt.s32.totalorder %s702_s15, 3 }
   0xa   : > { %p766_p6 = por %p112_p3, %p40_p0  ;;  %s704_s21 = smov [#allocation5]  }
   0xb   : > { %s956_s18 = scalar_select %p761_p4, 1, 0 }
   0xc   : > { %s957_s19 = scalar_select %p766_p6, 1, 0 }
   0xd   : > { %p771_p8 = pnand %p410_p5, %p119_p7  ;;  %s131_s22 = sshll.u32 %s704_s21, 4  ;;  %s775_s22 = int_to_ptr.vmem [resolvable:$true] %s131_s22 }
   0xe   : > { %s787_s24 = sadd.s32 1, %s702_s15   ;;  %s27_s25 = sadd.s32 1, %s698_s14 }
   0xf   : > { %s958_s20 = scalar_select %p771_p8, 1, 0 }
  0x10   : > { %p521_p9 = pneg %p771_p8  ;;  %s24_s26 = ssub.s32 %s702_s15, %s787_s24 }
  0x11   : > { %s574_s29 = scalar_lea.hbm %s950_s1, 2048 }
  0x12   : > { %p782_p11 = pnand %p521_p9, %p953_p1  ;;  %p575_p12 = scmp.ne.s32.totalorder %s950_s1, %s574_s29 }
  0x13   : > { %p581_p5 = scmp.lt.u32.totalorder %s574_s29, %s950_s1 }
  0x14   : > { %p576_p13 = pneg %p782_p11 }
  0x16   : > { %p577_p0 = pnand %p576_p13, %p575_p12 }
  0x18   : > { %p578_p3 = pneg %p577_p0 }
  0x1a   : > { %p583_p7 = pnand %p581_p5, %p578_p3 }
  0x1c   : > { %586 = shalt.err (!%p583_p7)
}
  0x1d   : > { %s587_s7 = scalar_lea.vmem %s775_s22, 2048  ;;  %p595_p2 = scmp.lt.s32.totalorder %s775_s22, %s775_s22 }
  0x1e   : > { %p588_p9 = scmp.ne.s32.totalorder %s775_s22, %s587_s7  ;;  %p596_p6 = scmp.lt.s32.totalorder %s587_s7, %s587_s7 }
  0x20   : > { %p590_p10 = pnand %p588_p9, %p576_p13  ;;  %p597_p4 = por %p596_p6, %p595_p2 }
  0x22   : > { %p591_p1 = pneg %p590_p10 }
  0x24   : > { %p598_p8 = pnand %p597_p4, %p591_p1 }
  0x26   : > { %601 = shalt.err (!%p598_p8)
}
  0x27   : > { %s705_s8 = smov 128   ;;  %s706_s9 = smov 8  }
  0x28   : > { %524 = dma.hbm_to_vmem [thread:$0]  (!%p782_p11), %s950_s1, 2048, %s775_s22, [#allocation6], %s705_s8, %s705_s8, %s706_s9  }
  0x29   : > { %p25_p1 = scmp.eq.s32.totalorder %s24_s26, 0  ;;  %p34_p2 = scmp.ne.s32.totalorder %s698_s14, %s694_s13 }
  0x2a   : > { %p35_p4 = scmp.eq.s32.totalorder %s702_s15, 0  ;;  %p534_p6 = scmp.lt.s32.totalorder %s702_s15, 2 }
  0x2b   : > { %s821_s17 = scalar_select %p25_p1, %s698_s14, %s27_s25  }
  0x2c   : > { %p36_p8 = por %p35_p4, %p34_p2  ;;  %p960_p10 = scmp.eq.s32.totalorder %s752_s16, 1 }
  0x2d   : > { %s148_s23 = sand.u32 1, %s698_s14   ;;  %s426_s27 = sshll.u32 %s702_s15, 8 }
  0x2e   : > { %p825_p12 = por %p960_p10, %p34_p2  ;;  %s413_s28 = sshll.u32 %s148_s23, 4 }
  0x2f   : > { %s834_s4 = scalar_lea.hbm %s949_s0, %s426_s27  ;;  %s152_s22 = scalar_lea.vmem [#allocation2], %s413_s28 }
  0x30   : > { %s159_s25 = sshll.u32 %s152_s22, 4  ;;  %p836_p11 = pnand %p534_p6, %p36_p8  ;;  %s840_s25 = int_to_ptr.vmem [resolvable:$true] %s159_s25 }
  0x31   : > { %s842_s5 = scalar_lea.sflag [#allocation3], %s148_s23  ;;  %s602_s6 = scalar_lea.hbm %s834_s4, 256 }
  0x32   : > { %p603_p13 = scmp.ne.s32.totalorder %s834_s4, %s602_s6  ;;  %p604_p0 = pneg %p836_p11 }
  0x33   : > { %s607_s11 = scalar_lea.hbm %s949_s0, 512  ;;  %p608_p7 = scmp.lt.u32.totalorder %s834_s4, %s949_s0 }
  0x34   : > { %p605_p3 = pnand %p604_p0, %p603_p13  ;;  %p609_p9 = scmp.lt.u32.totalorder %s607_s11, %s602_s6 }
  0x35   : > { %p611_p2 = scmp.lt.u32.totalorder %s602_s6, %s834_s4 }
  0x36   : > { %p606_p5 = pneg %p605_p3  ;;  %p610_p1 = por %p609_p9, %p608_p7 }
  0x38   : > { %p612_p4 = por %p611_p2, %p610_p1 }
  0x3a   : > { %p613_p6 = pnand %p612_p4, %p606_p5 }
  0x3c   : > { %616 = shalt.err (!%p613_p6)
}
  0x3d   : > { %s617_s23 = scalar_lea.vmem %s840_s25, 256  ;;  %s707_s29 = smov [#allocation2]  }
  0x3e   : > { %p618_p8 = scmp.ne.s32.totalorder %s840_s25, %s617_s23  ;;  %s622_s30 = sshll.u32 %s707_s29, 4  ;;  %s623_s30 = int_to_ptr.vmem [resolvable:$false] %s622_s30 }
  0x3f   : > { %s624_s22 = scalar_lea.vmem %s623_s30, 512  ;;  %p625_p3 = scmp.lt.s32.totalorder %s840_s25, %s623_s30 }
  0x40   : > { %p620_p10 = pnand %p618_p8, %p604_p0  ;;  %p626_p7 = scmp.lt.s32.totalorder %s624_s22, %s617_s23 }
  0x42   : > { %p621_p13 = pneg %p620_p10  ;;  %p627_p9 = por %p626_p7, %p625_p3 }
  0x44   : > { %p628_p1 = pnand %p627_p9, %p621_p13 }
  0x46   : > { %631 = shalt.err (!%p628_p1)
}
  0x47   : > { %528 = dma.hbm_to_vmem [thread:$0]  (!%p836_p11), %s834_s4, 256, %s840_s25, %s842_s5, %s705_s8, %s705_s8, %s706_s9  }
  0x48   : > { %p963_p0 = scmp.ne.s32.totalorder %s958_s20, 0 }
  0x49   : > { %s876_s6 = sand.u32 (!%p963_p0), 1, %s694_s13   ;;  %p964_p5 = scmp.ne.s32.totalorder (!%p963_p0), %s956_s18, 0 }
  0x4a   : > { %171 = sbr.rel (%p963_p0) target bundleno = 354 (0x162), region = 32  ;;  %s417_s7 = sshll.u32 (!%p963_p0), %s876_s6, 4 }
  0x4b   : > { %s174_s10 = scalar_lea.sflag (!%p963_p0), [#allocation3], %s876_s6  ;;  %s882_s26 = scalar_lea.vmem (!%p963_p0), [#allocation2], %s417_s7 }
  0x51   : > { %677 = dma.done.wait (%p964_p5), %s174_s10, 256  }
  0x52   : > { %679 = vsyncadd (%p964_p5), %s174_s10, 4294967040  ;;  %p965_p11 = scmp.eq.s32.totalorder %s752_s16, 0 }
  0x54   : > { %681 = dma.done.wait (%p965_p11), [#allocation6], 2048   ;;  %p966_p2 = pmov %p965_p11 }
  0x55   : > { %v208_v0 = vld [vmem:[#allocation5] sm:$0xff]  ;;  %v209_v1 = vld [vmem:[#allocation5 + $0x8] sm:$0xff]  ;;  %v210_v2 = vld [vmem:[#allocation5 + $0x10] sm:$0xff]  ;;  %s203_s8 = scalar_lea.vmem [#allocation7], %s417_s7  ;;  %s427_s4 = sshll.u32 %s752_s16, 8 }
  0x56   : > { %683 = vsyncadd (%p966_p2), [#allocation6], 4294965248  ;;  %v481_v3 = vpack.c.bf16 %v209_v1, %v208_v0  ;;  %v211_v4 = vld [vmem:[#allocation5 + $0x18] sm:$0xff]  ;;  %v212_v6 = vld [vmem:[#allocation5 + $0x20] sm:$0xff]  ;;  %s326_s9 = sshll.u32 %s203_s8, 4  ;;  %s905_s11 = scalar_lea.hbm %s952_s3, %s427_s4  ;;  %s900_s9 = int_to_ptr.vmem [resolvable:$true] %s326_s9 }
  0x57   : > { %v485_v5 = vpack.c.bf16 %v211_v4, %v210_v2  ;;  %v213_v7 = vld [vmem:[#allocation5 + $0x28] sm:$0xff]  ;;  %v206_v9 = vld [vmem:[%s882_s26] sm:$0xff]  ;;  %v215_v11 = vld [vmem:[#allocation5 + $0x38] sm:$0xff]  ;;  %s313_s27 = scalar_lea.sflag [#allocation4], %s876_s6  ;;  %s632_s28 = scalar_lea.vmem %s900_s9, 256 }
  0x58   : > { %482 = vmatprep.subr.bf16.mxu0 %v481_v3  ;;  %v489_v8 = vpack.c.bf16 %v213_v7, %v212_v6  ;;  %v214_v10 = vld [vmem:[#allocation5 + $0x30] sm:$0xff]  ;;  %478 = vmatprep.mubr.f32.mxu0 %v206_v9  ;;  %v216_v13 = vld [vmem:[#allocation5 + $0x40] sm:$0xff]  ;;  %v217_v14 = vld [vmem:[#allocation5 + $0x48] sm:$0xff]  ;;  %p633_p4 = scmp.ne.s32.totalorder %s900_s9, %s632_s28  ;;  %s708_s16 = smov [#allocation7]  }
  0x59   : > { %484 = vmatpush3.bf16.msra.mxu0 %v481_v3  ;;  %v493_v12 = vpack.c.bf16 %v215_v11, %v214_v10  ;;  %v497_v15 = vpack.c.bf16 %v217_v14, %v216_v13  ;;  %v218_v16 = vld [vmem:[#allocation5 + $0x50] sm:$0xff]  ;;  %v219_v17 = vld [vmem:[#allocation5 + $0x58] sm:$0xff]  ;;  %v220_v19 = vld [vmem:[#allocation5 + $0x60] sm:$0xff]  ;;  %s636_s23 = sshll.u32 %s708_s16, 4  ;;  %s637_s23 = int_to_ptr.vmem [resolvable:$false] %s636_s23 }
  0x5a   : > { %486 = vmatprep.subr.bf16.mxu0 %v485_v5  ;;  %v501_v18 = vpack.c.bf16 %v219_v17, %v218_v16  ;;  %v221_v20 = vld [vmem:[#allocation5 + $0x68] sm:$0xff]  ;;  %v222_v22 = vld [vmem:[#allocation5 + $0x70] sm:$0xff]  ;;  %v223_v23 = vld [vmem:[#allocation5 + $0x78] sm:$0xff]  ;;  %p634_p6 = pnand %p633_p4, %p825_p12  ;;  %s638_s29 = scalar_lea.vmem %s637_s23, 512 }
  0x5b   : > { %v505_v21 = vpack.c.bf16 %v221_v20, %v220_v19  ;;  %v509_v24 = vpack.c.bf16 %v223_v23, %v222_v22  ;;  %v207_v25 = vld [vmem:[%s882_s26 + $0x8] sm:$0xff]  ;;  %v420_v26 = vld [vmem:[%s951_s2] ss:$0 sm:$0xff]  ;;  %p639_p10 = scmp.lt.s32.totalorder %s900_s9, %s637_s23  ;;  %p640_p13 = scmp.lt.s32.totalorder %s638_s29, %s632_s28 }
  0x5c   : > { %p635_p8 = pneg %p634_p6 }
  0x5d   : > { %488 = vmatpush3.bf16.msra.mxu0 %v485_v5  ;;  %p641_p3 = por %p640_p13, %p639_p10 }
  0x5e   : > { %490 = vmatprep.subr.bf16.mxu0 %v489_v8 }
  0x5f   : > { %p642_p7 = pnand %p641_p3, %p635_p8 }
  0x61   : > { %492 = vmatpush3.bf16.msra.mxu0 %v489_v8 }
  0x62   : > { %494 = vmatprep.subr.bf16.mxu0 %v493_v12 }
  0x65   : > { %496 = vmatpush3.bf16.msra.mxu0 %v493_v12 }
  0x66   : > { %498 = vmatprep.subr.bf16.mxu0 %v497_v15 }
  0x69   : > { %500 = vmatpush3.bf16.msra.mxu0 %v497_v15 }
  0x6a   : > { %502 = vmatprep.subr.bf16.mxu0 %v501_v18 }
  0x6d   : > { %504 = vmatpush3.bf16.msra.mxu0 %v501_v18 }
  0x6e   : > { %506 = vmatprep.subr.bf16.mxu0 %v505_v21 }
  0x71   : > { %508 = vmatpush3.bf16.msra.mxu0 %v505_v21 }
  0x72   : > { %510 = vmatprep.subr.bf16.mxu0 %v509_v24 }
  0x75   : > { %512 = vmatpush3.bf16.msra.mxu0 %v509_v24 }
  0x78   : > { %479 = vmatmul.mubr.f32.vlgmr.msra.gmra.mrb[0].mxu0 %v207_v25 }
 0x14b   : > { %v480_v27 = vpop.f32.mrb[0].mxu0 }
 0x14c   : > { %v303_v28 = vadd.f32 %v480_v27, %v420_v26  ;;  %v297_v29 = vpop.f32.mrb[1].mxu0 }
 0x14d   : > { %v298_v30 = vadd.f32 %v420_v26, %v297_v29 }
 0x14e   : > { %v307_v31 = vmax.f32 %v303_v28, 0.0 }
 0x14f   : > { %v306_v32 = vmax.f32 %v298_v30, 0.0 }
 0x150   : > { %v309_v33 = vmin.f32 %v307_v31, 6.0 }
 0x151   : > { %v308_v34 = vmin.f32 %v306_v32, 6.0 }
 0x152   : > { %311 = vst [vmem:[%s203_s8 + $0x8] sm:$0xff] %v309_v33 }
 0x153   : > { %310 = vst [vmem:[%s203_s8] sm:$0xff] %v308_v34 }
 0x154   : > { %645 = shalt.err (!%p642_p7)
}
 0x155   : > { %s646_s30 = scalar_lea.hbm %s905_s11, 256  ;;  %s650_s10 = scalar_lea.hbm %s952_s3, 512 }
 0x156   : > { %p647_p9 = scmp.ne.s32.totalorder %s905_s11, %s646_s30  ;;  %p651_p5 = scmp.lt.u32.totalorder %s905_s11, %s952_s3 }
 0x157   : > { %p652_p11 = scmp.lt.u32.totalorder %s650_s10, %s646_s30  ;;  %p654_p4 = scmp.lt.u32.totalorder %s646_s30, %s905_s11 }
 0x158   : > { %p648_p1 = pnand %p647_p9, %p825_p12 }
 0x159   : > { %p653_p2 = por %p652_p11, %p651_p5 }
 0x15a   : > { %p649_p0 = pneg %p648_p1 }
 0x15b   : > { %p655_p6 = por %p654_p4, %p653_p2 }
 0x15d   : > { %p656_p8 = pnand %p655_p6, %p649_p0 }
 0x15f   : > { %659 = shalt.err (!%p656_p8)
}
 0x160   : > { %s709_s20 = smov 128   ;;  %s710_s8 = smov 8  }
 0x161   : > { %519 = dma.vmem_to_hbm [thread:$0]  (%p825_p12), %s900_s9, 256, %s905_s11, %s313_s27, %s709_s20, %s709_s20, %s710_s8  }
 0x162 PF: > { %s341_s4 = sand.u32 1, %s690_s12   ;;  %p967_p10 = scmp.ne.s32.totalorder %s957_s19, 0 }
 0x163   : > { %p968_p13 = scmp.ge.s32.totalorder %s702_s15, 2  ;;  %s342_s25 = scalar_lea.sflag [#allocation4], %s341_s4 }
 0x165   : > { %p530_p3 = pnand %p968_p13, %p967_p10 }
 0x167   : > { %685 = dma.done.wait (!%p530_p3), %s342_s25, 256  }
 0x168   : > { %687 = vsyncadd (!%p530_p3), %s342_s25, 4294967040  ;;  %p17_p7 = scmp.ge.s32.totalorder %s787_s24, 4   ;;  %s969_s12 = smov %s694_s13 }
 0x169   : > { %s970_s13 = smov %s698_s14  ;;  %s971_s14 = smov %s821_s17 }
 0x16a   : > { %s972_s15 = smov %s787_s24  ;;  %19 = sbr.rel (!%p17_p7) target bundleno = 6 (0x6), region = 81 }
 0x171   :  { %347 = vsyncpa [#allocation3], 1 }
 0x172   :  { %349 = vsyncpa [#allocation3 + $0x1], 1 }
 0x173   :  { %350 = vsyncpa [#allocation6], 1 }
 0x174   :  { %351 = vsyncpa [#allocation4], 1 }
 0x175   :  { %353 = vsyncpa [#allocation4 + $0x1], 1 }

</bundles_post_ra>
